<compile_context>
chip_gen: v5e
topology: v5e:2x2
jax: 0.10.0
libtpu: 0.0.40
codegen_flags: <defaults>
</compile_context>

<pallas_src>
import functools

import jax
import jax.numpy as jnp
from jax import lax
from jax.experimental import pallas as pl
from jax.experimental.pallas import tpu as pltpu
import numpy as np


_LANE = 128
_MAX_TILE_LANES = 32768            # bounded tile keeps double-buffered VMEM small
_MAX_PREDS_TILE_BYTES = 8 << 20    # budget for one preds tile


def _dice_stats_kernel(preds_ref, target_ref, tp_ref, pc_ref, tc_ref, *, hw, tile):
    """One (C, TILE) voxel tile of one batch element.

    preds_ref : (C, TILE) logits tile (input dtype)
    target_ref: (1, TILE) int32 label tile
    tp/pc/tc  : (C, 1) int32 per-batch-element accumulators
                (output blocks resident across the tile axis).
    """
    t = pl.program_id(1)

    @pl.when(t == 0)
    def _():
        tp_ref[...] = jnp.zeros_like(tp_ref)
        pc_ref[...] = jnp.zeros_like(pc_ref)
        tc_ref[...] = jnp.zeros_like(tc_ref)

    # Load in input dtype (bf16 stays bf16 across HBM); do the math in f32.
    preds = preds_ref[...].astype(jnp.float32)                    # (C, TILE)
    target = target_ref[...]                                      # (1, TILE)
    num_classes = preds.shape[0]

    # Channel argmax with torch-style first-occurrence tie-break.
    cls_iota = lax.broadcasted_iota(jnp.int32, preds.shape, 0)    # (C, TILE)
    max_val = jnp.max(preds, axis=0, keepdims=True)               # (1, TILE)
    cand = jnp.where(preds == max_val, cls_iota, num_classes)
    pred_cls = jnp.min(cand, axis=0, keepdims=True)               # (1, TILE)

    if hw % tile != 0:
        # Tail tile: lanes beyond the real voxel count hold unspecified data.
        # Push them to sentinel classes so they contribute to no count.
        lane = lax.broadcasted_iota(jnp.int32, (1, tile), 1)
        valid = (t * tile + lane) < hw
        pred_cls = jnp.where(valid, pred_cls, num_classes)
        target = jnp.where(valid, target, -1)

    pred_oh = pred_cls == cls_iota                                # (C, TILE) bool
    tgt_oh = target == cls_iota                                   # (C, TILE) bool
    agree = pred_cls == target                                    # (1, TILE) bool

    tp_ref[...] += jnp.sum(jnp.logical_and(pred_oh, agree).astype(jnp.int32),
                           axis=1, keepdims=True)
    pc_ref[...] += jnp.sum(pred_oh.astype(jnp.int32), axis=1, keepdims=True)
    tc_ref[...] += jnp.sum(tgt_oh.astype(jnp.int32), axis=1, keepdims=True)


def metric_forward(preds, target, loss):
    """Forward pass of the (Dice-concretized) Metric module.

    preds : (N, C, H, W) float logits      (NCHW, as in PyTorch)
    target: (N, H, W)    int labels in [0, C-1]
    loss  : scalar float
    Returns (100 * per_foreground_class_dice, loss/steps) with steps == 1,
    mirroring Metric.forward's compute_on_step behaviour.
    """
    N, C, H, W = preds.shape
    HW = H * W

    # Free reshapes off the native NCHW layout (no HBM transpose, no upcast).
    preds3 = preds.reshape(N, C, HW)
    target3 = target.reshape(N, 1, HW).astype(jnp.int32)

    bytes_per_elem = preds.dtype.itemsize
    sublane_rows = max(C, 8)  # C rows occupy at least one (8,128) tile of sublanes
    cap = (_MAX_PREDS_TILE_BYTES // (sublane_rows * bytes_per_elem)) // _LANE * _LANE
    max_tile = max(_LANE, min(_MAX_TILE_LANES, cap))
    hw_padded = pl.cdiv(HW, _LANE) * _LANE
    tile = min(max_tile, hw_padded)
    num_tiles = pl.cdiv(HW, tile)

    kernel = functools.partial(_dice_stats_kernel, hw=HW, tile=tile)

    out_shape = tuple(jax.ShapeDtypeStruct((N, C, 1), jnp.int32) for _ in range(3))
    out_spec = pl.BlockSpec((pl.Squeezed(), C, 1), lambda n, t: (n, 0, 0))

    cost = pl.CostEstimate(
        flops=12 * N * C * HW,
        transcendentals=0,
        bytes_accessed=N * HW * (C * bytes_per_elem + 4) + 3 * N * C * 4,
    )

    tp, pc, tc = pl.pallas_call(
        kernel,
        out_shape=out_shape,
        grid_spec=pltpu.PrefetchScalarGridSpec(
            num_scalar_prefetch=0,
            grid=(N, num_tiles),
            in_specs=[
                pl.BlockSpec((pl.Squeezed(), C, tile), lambda n, t: (n, 0, t)),
                pl.BlockSpec((pl.Squeezed(), 1, tile), lambda n, t: (n, 0, t)),
            ],
            out_specs=[out_spec, out_spec, out_spec],
        ),
        compiler_params=pltpu.CompilerParams(
            dimension_semantics=("parallel", "arbitrary")),
        cost_estimate=cost,
    )(preds3, target3)

    # Per-batch-element int32 partials -> exact global counts, then f32 math.
    tp = jnp.sum(tp[:, :, 0], axis=0).astype(jnp.float32)   # (C,)
    pc = jnp.sum(pc[:, :, 0], axis=0).astype(jnp.float32)
    tc = jnp.sum(tc[:, :, 0], axis=0).astype(jnp.float32)

    fp = pc - tp
    fn = tc - tp
    denom = 2.0 * tp + fp + fn
    score_present = jnp.where(denom > 0, 2.0 * tp / jnp.where(denom > 0, denom, 1.0), 0.0)
    score_absent = jnp.where(pc == 0, 1.0, 0.0)   # class absent in target: 1 iff also absent in preds
    dice = jnp.where(tc == 0, score_absent, score_present)[1:]   # foreground classes 1..C-1

    steps = jnp.float32(1.0)   # forward() accumulates exactly one update step
    return 100.0 * dice / steps, jnp.reshape(loss, (1,)).astype(jnp.float32) / steps


def _reference_forward(preds, target, loss):
    """Pure-JAX reference for correctness checking."""
    C = preds.shape[1]
    pred_cls = jnp.argmax(preds, axis=1)          # (N, H, W)
    dices = []
    for i in range(1, C):
        p = pred_cls == i
        t = target == i
        tp = jnp.sum(jnp.logical_and(p, t)).astype(jnp.float32)
        fp = jnp.sum(jnp.logical_and(p, ~t)).astype(jnp.float32)
        fn = jnp.sum(jnp.logical_and(~p, t)).astype(jnp.float32)
        denom = 2 * tp + fp + fn
        present = jnp.where(denom > 0, 2 * tp / jnp.where(denom > 0, denom, 1.0), 0.0)
        absent = jnp.where(jnp.sum(p) == 0, 1.0, 0.0)
        dices.append(jnp.where(jnp.sum(t) == 0, absent, present))
    dice = jnp.stack(dices)
    return 100.0 * dice, jnp.reshape(loss, (1,)).astype(jnp.float32)


def _check(key, N, C, H, W):
    k1, k2, k3 = jax.random.split(key, 3)
    preds = jax.random.normal(k1, (N, C, H, W), dtype=jnp.float32)
    target = jax.random.randint(k2, (N, H, W), 0, C, dtype=jnp.int32)
    loss = jax.random.uniform(k3, (), dtype=jnp.float32)

    dice, loss_out = metric_forward(preds, target, loss)
    jax.block_until_ready(dice)
    jax.block_until_ready(loss_out)

    ref_dice, ref_loss = _reference_forward(preds, target, loss)
    np.testing.assert_allclose(np.asarray(dice), np.asarray(ref_dice), rtol=1e-5, atol=1e-5)
    np.testing.assert_allclose(np.asarray(loss_out), np.asarray(ref_loss), rtol=1e-6, atol=1e-6)


if __name__ == "__main__":
    key = jax.random.PRNGKey(0)
    ka, kb = jax.random.split(key)

    # Lane-aligned case (HW % 128 == 0).
    _check(ka, N=2, C=4, H=16, W=16)
    # Non-aligned case exercising the in-kernel tail mask (HW = 225).
    _check(kb, N=2, C=4, H=15, W=15)

    print("KERNEL_OK")
</pallas_src>

<mosaic_0001>
module attributes {stable_mosaic.version = 11 : i64} {
  func.func @_dice_stats_kernel(%arg0: i32, %arg1: i32, %arg2: memref<1x4x256xf32, #tpu.memory_space<vmem>>, %arg3: memref<1x1x256xi32, #tpu.memory_space<vmem>>, %arg4: memref<1x4x1xi32, #tpu.memory_space<vmem>>, %arg5: memref<1x4x1xi32, #tpu.memory_space<vmem>>, %arg6: memref<1x4x1xi32, #tpu.memory_space<vmem>>) attributes {dimension_semantics = [#tpu.dimension_semantics<parallel>, #tpu.dimension_semantics<arbitrary>], iteration_bounds = array<i64: 2, 1>, scalar_prefetch = 0 : i64, scratch_operands = 0 : i64, tpu.core_type = #tpu.core_type<tc>, window_params = [{transform_indices = @transform_0, window_bounds = array<i64: 1, 4, 256>}, {transform_indices = @transform_1, window_bounds = array<i64: 1, 1, 256>}, {transform_indices = @transform_2, window_bounds = array<i64: 1, 4, 1>}, {transform_indices = @transform_3, window_bounds = array<i64: 1, 4, 1>}, {transform_indices = @transform_4, window_bounds = array<i64: 1, 4, 1>}]} {
    %c0_i32 = arith.constant 0 : i32
    %0 = arith.cmpi eq, %arg1, %c0_i32 : i32
    %1 = arith.extui %0 : i1 to i32
    %c0_i32_0 = arith.constant 0 : i32
    %2 = arith.cmpi ne, %1, %c0_i32_0 : i32
    scf.if %2 {
      %c0_i32_28 = arith.constant 0 : i32
      %50 = vector.broadcast %c0_i32_28 : i32 to vector<4x1xi32>
      %c0_29 = arith.constant 0 : index
      %c0_30 = arith.constant 0 : index
      %c0_31 = arith.constant 0 : index
      %51 = vector.load %arg4[%c0_29, %c0_30, %c0_31] : memref<1x4x1xi32, #tpu.memory_space<vmem>>, vector<1x4x1xi32>
      %52 = vector.shape_cast %51 : vector<1x4x1xi32> to vector<4x1xi32>
      %53 = vector.shape_cast %50 : vector<4x1xi32> to vector<1x4x1xi32>
      tpu.vector_store %arg4[%c0_29, %c0_30, %c0_31], %53 {strides = array<i32>} : memref<1x4x1xi32, #tpu.memory_space<vmem>>, vector<1x4x1xi32>,
      %c0_i32_32 = arith.constant 0 : i32
      %54 = vector.broadcast %c0_i32_32 : i32 to vector<4x1xi32>
      %c0_33 = arith.constant 0 : index
      %c0_34 = arith.constant 0 : index
      %c0_35 = arith.constant 0 : index
      %55 = vector.load %arg5[%c0_33, %c0_34, %c0_35] : memref<1x4x1xi32, #tpu.memory_space<vmem>>, vector<1x4x1xi32>
      %56 = vector.shape_cast %55 : vector<1x4x1xi32> to vector<4x1xi32>
      %57 = vector.shape_cast %54 : vector<4x1xi32> to vector<1x4x1xi32>
      tpu.vector_store %arg5[%c0_33, %c0_34, %c0_35], %57 {strides = array<i32>} : memref<1x4x1xi32, #tpu.memory_space<vmem>>, vector<1x4x1xi32>,
      %c0_i32_36 = arith.constant 0 : i32
      %58 = vector.broadcast %c0_i32_36 : i32 to vector<4x1xi32>
      %c0_37 = arith.constant 0 : index
      %c0_38 = arith.constant 0 : index
      %c0_39 = arith.constant 0 : index
      %59 = vector.load %arg6[%c0_37, %c0_38, %c0_39] : memref<1x4x1xi32, #tpu.memory_space<vmem>>, vector<1x4x1xi32>
      %60 = vector.shape_cast %59 : vector<1x4x1xi32> to vector<4x1xi32>
      %61 = vector.shape_cast %58 : vector<4x1xi32> to vector<1x4x1xi32>
      tpu.vector_store %arg6[%c0_37, %c0_38, %c0_39], %61 {strides = array<i32>} : memref<1x4x1xi32, #tpu.memory_space<vmem>>, vector<1x4x1xi32>,
    } else {
    }
    %c0 = arith.constant 0 : index
    %c0_1 = arith.constant 0 : index
    %c0_2 = arith.constant 0 : index
    %3 = vector.load %arg2[%c0, %c0_1, %c0_2] : memref<1x4x256xf32, #tpu.memory_space<vmem>>, vector<1x4x256xf32>
    %4 = vector.shape_cast %3 : vector<1x4x256xf32> to vector<4x256xf32>
    %c0_3 = arith.constant 0 : index
    %c0_4 = arith.constant 0 : index
    %c0_5 = arith.constant 0 : index
    %5 = vector.load %arg3[%c0_3, %c0_4, %c0_5] : memref<1x1x256xi32, #tpu.memory_space<vmem>>, vector<1x1x256xi32>
    %6 = vector.shape_cast %5 : vector<1x1x256xi32> to vector<1x256xi32>
    %7 = tpu.iota {dimensions = array<i32: 0>} : vector<4x256xi32>
    %cst = arith.constant dense<0xFF800000> : vector<256xf32>
    %8 = vector.multi_reduction <maximumf>, %4, %cst [0] : vector<4x256xf32> to vector<256xf32>
    %9 = vector.shape_cast %8 : vector<256xf32> to vector<1x256xf32>
    %10 = vector.broadcast %9 : vector<1x256xf32> to vector<4x256xf32>
    %11 = arith.cmpf oeq, %4, %10 : vector<4x256xf32>
    %c4_i32 = arith.constant 4 : i32
    %12 = vector.broadcast %c4_i32 : i32 to vector<4x256xi32>
    %13 = arith.select %11, %7, %12 : vector<4x256xi1>, vector<4x256xi32>
    %cst_6 = arith.constant dense<2147483647> : vector<256xi32>
    %14 = vector.multi_reduction <minsi>, %13, %cst_6 [0] : vector<4x256xi32> to vector<256xi32>
    %15 = vector.shape_cast %14 : vector<256xi32> to vector<1x256xi32>
    %16 = vector.broadcast %15 : vector<1x256xi32> to vector<4x256xi32>
    %17 = arith.cmpi eq, %16, %7 : vector<4x256xi32>
    %18 = vector.broadcast %6 : vector<1x256xi32> to vector<4x256xi32>
    %19 = arith.cmpi eq, %18, %7 : vector<4x256xi32>
    %20 = arith.cmpi eq, %15, %6 : vector<1x256xi32>
    %c0_7 = arith.constant 0 : index
    %c0_8 = arith.constant 0 : index
    %c0_9 = arith.constant 0 : index
    %21 = vector.load %arg4[%c0_7, %c0_8, %c0_9] : memref<1x4x1xi32, #tpu.memory_space<vmem>>, vector<1x4x1xi32>
    %22 = vector.shape_cast %21 : vector<1x4x1xi32> to vector<4x1xi32>
    %23 = vector.broadcast %20 : vector<1x256xi1> to vector<4x256xi1>
    %24 = arith.andi %17, %23 : vector<4x256xi1>
    %25 = arith.extui %24 : vector<4x256xi1> to vector<4x256xi32>
    %cst_10 = arith.constant dense<0> : vector<4xi32>
    %26 = vector.multi_reduction <add>, %25, %cst_10 [1] : vector<4x256xi32> to vector<4xi32>
    %27 = vector.shape_cast %26 : vector<4xi32> to vector<4x1xi32>
    %28 = arith.addi %22, %27 : vector<4x1xi32>
    %c0_11 = arith.constant 0 : index
    %c0_12 = arith.constant 0 : index
    %c0_13 = arith.constant 0 : index
    %29 = vector.load %arg4[%c0_11, %c0_12, %c0_13] : memref<1x4x1xi32, #tpu.memory_space<vmem>>, vector<1x4x1xi32>
    %30 = vector.shape_cast %29 : vector<1x4x1xi32> to vector<4x1xi32>
    %31 = vector.shape_cast %28 : vector<4x1xi32> to vector<1x4x1xi32>
    tpu.vector_store %arg4[%c0_11, %c0_12, %c0_13], %31 {strides = array<i32>} : memref<1x4x1xi32, #tpu.memory_space<vmem>>, vector<1x4x1xi32>,
    %c0_14 = arith.constant 0 : index
    %c0_15 = arith.constant 0 : index
    %c0_16 = arith.constant 0 : index
    %32 = vector.load %arg5[%c0_14, %c0_15, %c0_16] : memref<1x4x1xi32, #tpu.memory_space<vmem>>, vector<1x4x1xi32>
    %33 = vector.shape_cast %32 : vector<1x4x1xi32> to vector<4x1xi32>
    %34 = arith.extui %17 : vector<4x256xi1> to vector<4x256xi32>
    %cst_17 = arith.constant dense<0> : vector<4xi32>
    %35 = vector.multi_reduction <add>, %34, %cst_17 [1] : vector<4x256xi32> to vector<4xi32>
    %36 = vector.shape_cast %35 : vector<4xi32> to vector<4x1xi32>
    %37 = arith.addi %33, %36 : vector<4x1xi32>
    %c0_18 = arith.constant 0 : index
    %c0_19 = arith.constant 0 : index
    %c0_20 = arith.constant 0 : index
    %38 = vector.load %arg5[%c0_18, %c0_19, %c0_20] : memref<1x4x1xi32, #tpu.memory_space<vmem>>, vector<1x4x1xi32>
    %39 = vector.shape_cast %38 : vector<1x4x1xi32> to vector<4x1xi32>
    %40 = vector.shape_cast %37 : vector<4x1xi32> to vector<1x4x1xi32>
    tpu.vector_store %arg5[%c0_18, %c0_19, %c0_20], %40 {strides = array<i32>} : memref<1x4x1xi32, #tpu.memory_space<vmem>>, vector<1x4x1xi32>,
    %c0_21 = arith.constant 0 : index
    %c0_22 = arith.constant 0 : index
    %c0_23 = arith.constant 0 : index
    %41 = vector.load %arg6[%c0_21, %c0_22, %c0_23] : memref<1x4x1xi32, #tpu.memory_space<vmem>>, vector<1x4x1xi32>
    %42 = vector.shape_cast %41 : vector<1x4x1xi32> to vector<4x1xi32>
    %43 = arith.extui %19 : vector<4x256xi1> to vector<4x256xi32>
    %cst_24 = arith.constant dense<0> : vector<4xi32>
    %44 = vector.multi_reduction <add>, %43, %cst_24 [1] : vector<4x256xi32> to vector<4xi32>
    %45 = vector.shape_cast %44 : vector<4xi32> to vector<4x1xi32>
    %46 = arith.addi %42, %45 : vector<4x1xi32>
    %c0_25 = arith.constant 0 : index
    %c0_26 = arith.constant 0 : index
    %c0_27 = arith.constant 0 : index
    %47 = vector.load %arg6[%c0_25, %c0_26, %c0_27] : memref<1x4x1xi32, #tpu.memory_space<vmem>>, vector<1x4x1xi32>
    %48 = vector.shape_cast %47 : vector<1x4x1xi32> to vector<4x1xi32>
    %49 = vector.shape_cast %46 : vector<4x1xi32> to vector<1x4x1xi32>
    tpu.vector_store %arg6[%c0_25, %c0_26, %c0_27], %49 {strides = array<i32>} : memref<1x4x1xi32, #tpu.memory_space<vmem>>, vector<1x4x1xi32>,
    return
  }
  func.func @transform_0(%arg0: i32, %arg1: i32) -> (i32, i32, i32) {
    %c0_i32 = arith.constant 0 : i32
    %c0_i32_0 = arith.constant 0 : i32
    return %arg0, %c0_i32, %arg1 : i32, i32, i32
  }
  func.func @transform_1(%arg0: i32, %arg1: i32) -> (i32, i32, i32) {
    %c0_i32 = arith.constant 0 : i32
    %c0_i32_0 = arith.constant 0 : i32
    return %arg0, %c0_i32, %arg1 : i32, i32, i32
  }
  func.func @transform_2(%arg0: i32, %arg1: i32) -> (i32, i32, i32) {
    %c0_i32 = arith.constant 0 : i32
    %c0_i32_0 = arith.constant 0 : i32
    %c0_i32_1 = arith.constant 0 : i32
    return %arg0, %c0_i32, %c0_i32_0 : i32, i32, i32
  }
  func.func @transform_3(%arg0: i32, %arg1: i32) -> (i32, i32, i32) {
    %c0_i32 = arith.constant 0 : i32
    %c0_i32_0 = arith.constant 0 : i32
    %c0_i32_1 = arith.constant 0 : i32
    return %arg0, %c0_i32, %c0_i32_0 : i32, i32, i32
  }
  func.func @transform_4(%arg0: i32, %arg1: i32) -> (i32, i32, i32) {
    %c0_i32 = arith.constant 0 : i32
    %c0_i32_0 = arith.constant 0 : i32
    %c0_i32_1 = arith.constant 0 : i32
    return %arg0, %c0_i32, %c0_i32_0 : i32, i32, i32
  }
}

</mosaic_0001>

<bundles_post_ra>
// kernel: tpu_custom_call.1
= control target key start
LH: loop header
LB: loop body
LE: loop exit
PB: predicated region body
PF: predicated region fallthrough
CT: control target
= control target key end

     0   :  { %10 = vsyncpa [#allocation3], 0  ;;  %s997_s0 = inlined_call_operand.hbm [shape: f32[2,4,256], index: 0, kind: input, shape index: {}]   ;;  %s998_s1 = inlined_call_operand.hbm [shape: s32[2,1,256], index: 1, kind: input, shape index: {}]   ;;  %s999_s2 = inlined_call_operand.vmem [shape: s32[2,4,1], index: 2, kind: output, shape index: {0}]   ;;  %s1000_s3 = inlined_call_operand.vmem [shape: s32[2,4,1], index: 3, kind: output, shape index: {1}]   ;;  %s1001_s4 = inlined_call_operand.vmem [shape: s32[2,4,1], index: 4, kind: output, shape index: {2}]  }
   0x1   :  { %12 = vsyncpa [#allocation3 + $0x1], 0 }
   0x2   :  { %13 = vsyncpa [#allocation5], 0 }
   0x3   :  { %15 = vsyncpa [#allocation5 + $0x1], 0  ;;  %s828_s15 = smov 0   ;;  %s830_s16 = smov 0  }
   0x4   :  { %s832_s17 = smov 0   ;;  %s834_s18 = smov 0  }
   0x5   :  { %s836_s19 = smov 0   ;;  %s838_s20 = smov 0  }
   0x6 LB: > { %s605_s21 = sadd.s32 4294967295, %s799_s20   ;;  %s33_s22 = sadd.s32 1, %s795_s19  ;;  %s799_s20 = sphi %s838_s20, %s21_s20   ;;  %s795_s19 = sphi %s836_s19, %s1009_s19   ;;  %s791_s18 = sphi %s834_s18, %s1008_s18   ;;  %s787_s17 = sphi %s832_s17, %s1007_s17   ;;  %s783_s16 = sphi %s830_s16, %s1006_s16   ;;  %s779_s15 = sphi %s828_s15, %s1005_s15  }
   0x7   : > { %p35_p0 = scmp.ge.s32.totalorder %s33_s22, 2  ;;  %s42_s23 = sadd.s32 1, %s787_s17 }
   0x8   : > { %p49_p1 = scmp.ne.s32.totalorder %s787_s17, %s783_s16  ;;  %p50_p2 = scmp.eq.s32.totalorder %s799_s20, 0 }
   0x9   : > { %s1011_s22 = smov (%p35_p0, %s33_s22), 0  ;;  %p55_p4 = scmp.ne.s32.totalorder %s783_s16, %s779_s15 }
   0xa   : > { %p864_p3 = por %p50_p2, %p49_p1  ;;  %s37_s25 = ssub.s32 %s795_s19, %s1011_s22 }
   0xb   : > { %p56_p5 = scmp.eq.s32.totalorder %s605_s21, 0  ;;  %p40_p6 = scmp.eq.s32.totalorder %s37_s25, 0 }
   0xc   : > { %p634_p8 = scmp.lt.s32.totalorder %s799_s20, 2  ;;  %s185_s28 = sand.u32 1, %s787_s17  }
   0xd   : > { %p871_p7 = por %p56_p5, %p55_p4  ;;  %s622_s29 = sshll.u32 %s795_s19, 3 }
   0xe   : > { %s877_s27 = scalar_select %p40_p6, %s787_s17, %s42_s23  }
   0xf   : > { %s609_s30 = sshll.u32 %s185_s28, 3  ;;  %s196_s7 = scalar_lea.hbm %s997_s0, %s622_s29 }
  0x10   : > { %s198_s8 = sshll.u32 %s196_s7, 4  ;;  %s189_s9 = scalar_lea.vmem [#allocation2], %s609_s30  ;;  %s199_s8 = int_to_ptr.hbm [resolvable:$true] %s198_s8 }
  0x11   : > { %s200_s10 = sshll.u32 %s189_s9, 4  ;;  %p886_p9 = pnand %p634_p8, %p864_p3  ;;  %s201_s10 = int_to_ptr.vmem [resolvable:$true] %s200_s10 }
  0x12   : > { %p614_p10 = scmp.ge.s32.totalorder %s799_s20, 1  ;;  %p226_p11 = scmp.lt.s32.totalorder %s799_s20, 3 }
  0x13   : > { %s612_s12 = sshll.u32 %s185_s28, 1  ;;  %s186_s13 = scalar_lea.sflag [#allocation3], %s185_s28 }
  0x14   : > { %630 = dma.hbm_to_vmem [thread:$0]  (!%p886_p9), %s199_s8, 128, %s201_s10, %s186_s13  }
  0x15   : > { %p227_p12 = pnand %p614_p10, %p226_p11  ;;  %s613_s14 = sshll.u32 %s795_s19, 1 }
  0x16   : > { %s211_s15 = scalar_lea.vmem [#allocation4], %s612_s12  ;;  %s217_s24 = scalar_lea.hbm %s998_s1, %s613_s14 }
  0x17   : > { %s221_s21 = sshll.u32 %s211_s15, 4  ;;  %s219_s29 = sshll.u32 %s217_s24, 4  ;;  %s222_s21 = int_to_ptr.vmem [resolvable:$true] %s221_s21  ;;  %s220_s29 = int_to_ptr.hbm [resolvable:$true] %s219_s29 }
  0x18   : > { %s208_s30 = scalar_lea.sflag [#allocation5], %s185_s28  ;;  %230 = sbr.rel (%p227_p12) target bundleno = 229 (0xe5), region = 28 }
  0x19   : > { %633 = dma.hbm_to_vmem [thread:$0]  (!%p886_p9), %s220_s29, 32, %s222_s21, %s208_s30  }
  0x1a   : > { %s232_s5 = sand.u32 (!%p227_p12), 1, %s783_s16  }
  0x1b   : > { %s615_s6 = sshll.u32 (!%p227_p12), %s232_s5, 3  ;;  %s233_s7 = scalar_lea.sflag (!%p227_p12), [#allocation3], %s232_s5 }
  0x1c   : > { %s236_s8 = scalar_lea.vmem (!%p227_p12), [#allocation2], %s615_s6 }
  0x1d   : > { %770 = dma.done.wait (%p871_p7), %s233_s7, 128  }
  0x1e   : > { %772 = vsyncadd (%p871_p7), %s233_s7, 4294967168  ;;  %s616_s9 = sshll.u32 %s232_s5, 1  ;;  %s243_s10 = scalar_lea.sflag [#allocation5], %s232_s5 }
  0x1f   : > { %s246_s12 = scalar_lea.vmem [#allocation4], %s616_s9 }
  0x20   : > { %774 = dma.done.wait (%p871_p7), %s243_s10, 32  }
  0x21   : > { %776 = vsyncadd (%p871_p7), %s243_s10, 4294967264  ;;  %v308_v0 = vlaneseq  ;;  %v909_v1 = vld [vmem:[%s246_s12] sm:$0x3]  ;;  %v306_v2 = vld [vmem:[%s236_s8] sm:$0xff]  ;;  %vm316_vm2 = vcmask 1043456   ;;  %v801_v6 = vmov 0  }
  0x22   : > { %v367_v4 = vperm.slane %v909_v1, 0  ;;  %v368_v5 = vperm.slane %v909_v1, 1  ;;  %311 = vst [vmem:[#allocation1] ss:$2 sm:$0xff] %v306_v2  ;;  %v802_v23 = vmov 839922192  }
  0x23   : > { %v911_v3 = vshrl.u32 %v308_v0, 7  ;;  %v338_v24 = vunpack.c.l.s4 %v802_v23  ;;  %p286_p13 = scmp.lt.s32.totalorder %s791_s18, 1 }
  0x25   : > { %vm369_vm0 = vcmp.eq.s32.totalorder %v367_v4, %v911_v3  ;;  %vm370_vm1 = vcmp.eq.s32.totalorder %v368_v5, %v911_v3  ;;  %v339_v29 = vunpack.c.0.s8 %v338_v24  ;;  %s1013_s18 = smov (!%p286_p13, %s791_s18), 1 }
  0x26   : > { %v423_v7 = vsel %vm369_vm0, 1, %v801_v6  ;;  %v424_v8 = vsel %vm370_vm1, 1, %v801_v6  ;;  %s617_s26 = sshll.u32 %s1013_s18, 2 }
  0x27   : > { %v425_v9 = vsel %vm316_vm2, %v423_v7, 0  ;;  %v426_v10 = vsel %vm316_vm2, %v424_v8, 0  ;;  %v340_v33 = vperm.slane %v911_v3, %v339_v29  ;;  %s289_s13 = scalar_lea.vmem %s999_s2, %s617_s26  ;;  %s297_s21 = scalar_lea.vmem %s1001_s4, %s617_s26 }
  0x28   : > { %v925_v11 = vadd.s32 %v426_v10, %v425_v9  ;;  %s293_s24 = scalar_lea.vmem %s1000_s3, %s617_s26 }
  0x29   : > { %v312_v13 = vld.sshfl [vmem:[#allocation1] sm:$0xff pattern:$0x75316420]  ;;  %v313_v14 = vld.sshfl [vmem:[#allocation1 + $0x8] sm:$0xff pattern:$0x75316420] }
  0x2a   : > { %v429_v12 = vshrl.u32 %v925_v11, 16  ;;  %v317_v15 = vsel %vm316_vm2, %v312_v13, -inf  ;;  %v324_v18 = vsel %vm316_vm2, %v313_v14, -inf  ;;  %v428_v7 = vand.u32 65535, %v925_v11 }
  0x2b   : > { %v318_v17 = vrot.slane %v317_v15, 4  ;;  %v325_v19 = vrot.slane %v324_v18, 4 }
  0x2c   : > { %v431_v16 = vcvt.s32.f32 %v429_v12  ;;  %v430_v12 = vcvt.s32.f32 %v428_v7 }
  0x2d   : > { %v319_v20 = vmax.f32 %v317_v15, %v318_v17  ;;  %v326_v21 = vmax.f32 %v324_v18, %v325_v19 }
  0x2e   : > { %434 = vadd.xlane.f32.xlu1 %v431_v16 }
  0x2f   : > { %v320_v22 = vrot.slane %v319_v20, 2  ;;  %v327_v25 = vrot.slane %v326_v21, 2 }
  0x31   : > { %v321_v26 = vmax.f32 %v319_v20, %v320_v22  ;;  %v328_v27 = vmax.f32 %v326_v21, %v327_v25 }
  0x33   : > { %v322_v28 = vrot.slane %v321_v26, 1  ;;  %v329_v30 = vrot.slane %v328_v27, 1 }
  0x35   : > { %v323_v31 = vmax.f32 %v321_v26, %v322_v28  ;;  %v330_v32 = vmax.f32 %v328_v27, %v329_v30 }
  0x37   : > { %v333_v34 = vrot.slane %v330_v32, 4 }
  0x39   : > { %v334_v35 = vsel %vm316_vm2, %v323_v31, %v333_v34 }
  0x3a   : > { %vm336_vm3 = vcmp.eq.f32.partialorder %v306_v2, %v334_v35 }
  0x3b   : > { %v341_v36 = vsel %vm336_vm3, %v340_v33, 4 }
  0x3c   : > { %342 = vst [vmem:[#allocation1] ss:$2 sm:$0xff] %v341_v36 }
  0x43   : > { %v343_v37 = vld.sshfl [vmem:[#allocation1] sm:$0xff pattern:$0x75316420]  ;;  %v344_v38 = vld.sshfl [vmem:[#allocation1 + $0x8] sm:$0xff pattern:$0x75316420] }
  0x44   : > { %v345_v39 = vsel %vm316_vm2, %v343_v37, 2147483647  ;;  %v355_v40 = vsel %vm316_vm2, %v344_v38, 2147483647 }
  0x45   : > { %v346_v41 = vrot.slane %v345_v39, 4  ;;  %v356_v42 = vrot.slane %v355_v40, 4 }
  0x47   : > { %vm347_vm4 = vcmp.lt.s32.totalorder %v345_v39, %v346_v41  ;;  %vm357_vm5 = vcmp.lt.s32.totalorder %v355_v40, %v356_v42 }
  0x48   : > { %v348_v43 = vsel %vm347_vm4, %v345_v39, %v346_v41  ;;  %v358_v44 = vsel %vm357_vm5, %v355_v40, %v356_v42 }
  0x49   : > { %v349_v45 = vrot.slane %v348_v43, 2  ;;  %v359_v46 = vrot.slane %v358_v44, 2 }
  0x4b   : > { %vm350_vm6 = vcmp.lt.s32.totalorder %v348_v43, %v349_v45  ;;  %vm360_vm7 = vcmp.lt.s32.totalorder %v358_v44, %v359_v46 }
  0x4c   : > { %v351_v47 = vsel %vm350_vm6, %v348_v43, %v349_v45  ;;  %v361_v48 = vsel %vm360_vm7, %v358_v44, %v359_v46 }
  0x4d   : > { %v352_v49 = vrot.slane %v351_v47, 1  ;;  %v362_v50 = vrot.slane %v361_v48, 1 }
  0x4f   : > { %vm353_vm8 = vcmp.lt.s32.totalorder %v351_v47, %v352_v49  ;;  %vm363_vm9 = vcmp.lt.s32.totalorder %v361_v48, %v362_v50 }
  0x50   : > { %v354_v51 = vsel %vm353_vm8, %v351_v47, %v352_v49  ;;  %v364_v52 = vsel %vm363_vm9, %v361_v48, %v362_v50 }
  0x51   : > { %vm365_vm10 = vcmp.eq.s32.totalorder %v354_v51, %v911_v3  ;;  %vm366_vm11 = vcmp.eq.s32.totalorder %v364_v52, %v911_v3  ;;  %vm371_vm12 = vcmp.eq.s32.totalorder %v354_v51, %v367_v4  ;;  %vm372_vm13 = vcmp.eq.s32.totalorder %v364_v52, %v368_v5 }
  0x52   : > { %v403_v53 = vsel %vm365_vm10, 1, %v801_v6  ;;  %v404_v54 = vsel %vm366_vm11, 1, %v801_v6  ;;  %v374_v55 = vsel %vm371_vm12, 1, %v801_v6  ;;  %v375_v56 = vsel %vm372_vm13, 1, %v801_v6 }
  0x53   : > { %v405_v57 = vsel %vm316_vm2, %v403_v53, 0  ;;  %v406_v58 = vsel %vm316_vm2, %v404_v54, 0  ;;  %v376_v59 = vperm.slane %v374_v55, 0  ;;  %v377_v60 = vperm.slane %v375_v56, 0 }
  0x54   : > { %v407_v61 = vadd.s32 %v406_v58, %v405_v57 }
  0x55   : > { %vm378_vm14 = vcmp.eq.s32.totalorder %v376_v59, 1  ;;  %vm379_vm15 = vcmp.eq.s32.totalorder %v377_v60, 1 }
  0x56   : > { %v408_v62 = vand.u32 65535, %v407_v61  ;;  %vm380_vm0 = vmand %vm365_vm10, %vm378_vm14  ;;  %v409_v13 = vshrl.u32 %v407_v61, 16 }
  0x57   : > { %vm381_vm1 = vmand %vm366_vm11, %vm379_vm15  ;;  %v382_v63 = vsel %vm380_vm0, 1, %v801_v6 }
  0x58   : > { %v410_v0 = vcvt.s32.f32 %v408_v62  ;;  %v383_v1 = vsel %vm381_vm1, 1, %v801_v6  ;;  %v384_v2 = vsel %vm316_vm2, %v382_v63, 0  ;;  %v411_v14 = vcvt.s32.f32 %v409_v13 }
  0x59   : > { %v385_v4 = vsel %vm316_vm2, %v383_v1, 0  ;;  %vm302_vm2 = vcmask 3072  }
  0x5a   : > { %412 = vadd.xlane.f32.xlu2 %v410_v0  ;;  %v386_v5 = vadd.s32 %v385_v4, %v384_v2  ;;  %303 = vst.msk [vmem:[%s289_s13] sm:$0xf] %vm302_vm2, %v801_v6 }
  0x5b   : > { %305 = vst.msk [vmem:[%s297_s21] sm:$0xf] %vm302_vm2, %v801_v6 }
  0x5c   : > { %v388_v8 = vshrl.u32 %v386_v5, 16  ;;  %v387_v9 = vand.u32 65535, %v386_v5  ;;  %304 = vst.msk [vmem:[%s293_s24] sm:$0xf] %vm302_vm2, %v801_v6 }
  0x5e   : > { %v390_v10 = vcvt.s32.f32 %v388_v8  ;;  %v389_v3 = vcvt.s32.f32 %v387_v9 }
  0x60   : > { %393 = vadd.xlane.f32.xlu0 %v390_v10  ;;  %391 = vadd.xlane.f32.xlu1 %v389_v3 }
  0x61   : > { %v373_v25 = vld [vmem:[%s289_s13] sm:$0xf] }
  0x62   : > { %432 = vadd.xlane.f32.xlu2 %v430_v12  ;;  %v422_v26 = vld [vmem:[%s297_s21] sm:$0xf] }
  0x63   : > { %v402_v34 = vld [vmem:[%s293_s24] sm:$0xf] }
  0x68   : > { %414 = vadd.xlane.f32.xlu0 %v411_v14 }
  0xa1   : > { %v435_v11 = vpop.xlane.xlu1 %434 }
  0xa2   : > { %v437_v16 = vcvt.f32.s32 %v435_v11 }
  0xa4   : > { %v438_v19 = vshll.u32 %v437_v16, 16 }
  0xcd   : > { %v413_v15 = vpop.xlane.xlu2 %412 }
  0xce   : > { %v416_v32 = vcvt.f32.s32 %v413_v15 }
  0xd3   : > { %v394_v17 = vpop.xlane.xlu0 %393  ;;  %v392_v18 = vpop.xlane.xlu1 %391 }
  0xd4   : > { %v396_v20 = vcvt.f32.s32 %v394_v17  ;;  %v395_v21 = vcvt.f32.s32 %v392_v18 }
  0xd5   : > { %v433_v22 = vpop.xlane.xlu2 %432 }
  0xd6   : > { %v397_v23 = vshll.u32 %v396_v20, 16  ;;  %v436_v24 = vcvt.f32.s32 %v433_v22 }
  0xd8   : > { %v398_v27 = vadd.s32 %v397_v23, %v395_v21  ;;  %v439_v28 = vadd.s32 %v438_v19, %v436_v24 }
  0xda   : > { %v399_v29 = vadd.s32 %v398_v27, %v373_v25  ;;  %v440_v30 = vadd.s32 %v439_v28, %v422_v26 }
  0xdb   : > { %v415_v31 = vpop.xlane.xlu0 %414 }
  0xdc   : > { %401 = vst.msk [vmem:[%s289_s13] sm:$0xf] %vm302_vm2, %v399_v29  ;;  %v417_v6 = vcvt.f32.s32 %v415_v31 }
  0xdd   : > { %441 = vst.msk [vmem:[%s297_s21] sm:$0xf] %vm302_vm2, %v440_v30 }
  0xde   : > { %v418_v33 = vshll.u32 %v417_v6, 16 }
  0xe0   : > { %v419_v35 = vadd.s32 %v418_v33, %v416_v32 }
  0xe2   : > { %v420_v36 = vadd.s32 %v419_v35, %v402_v34 }
  0xe4   : > { %421 = vst.msk [vmem:[%s293_s24] sm:$0xf] %vm302_vm2, %v420_v36 }
  0xe5 PF: > { %s21_s20 = sadd.s32 1, %s799_s20   ;;  %s1005_s15 = smov %s783_s16 }
  0xe6   : > { %p18_p0 = scmp.ge.s32.totalorder %s21_s20, 4   ;;  %s1006_s16 = smov %s787_s17 }
  0xe7   : > { %s1007_s17 = smov %s877_s27  ;;  %s1008_s18 = smov %s795_s19 }
  0xe8   : > { %s1009_s19 = smov %s1011_s22  ;;  %20 = sbr.rel (!%p18_p0) target bundleno = 6 (0x6), region = 109 }
  0xed   :  { %489 = vsyncpa [#allocation3], 1 }
  0xee   :  { %491 = vsyncpa [#allocation3 + $0x1], 1 }
  0xef   :  { %492 = vsyncpa [#allocation5], 1 }
  0xf0   :  { %494 = vsyncpa [#allocation5 + $0x1], 1 }

</bundles_post_ra>
